<compile_context>
chip_gen: v6e
topology: v6e:2x2x1
jax: 0.10.0
libtpu: 0.0.40
codegen_flags: <defaults>
</compile_context>

<pallas_src>
import functools

import jax
import jax.numpy as jnp
from jax.experimental import pallas as pl
from jax.experimental.pallas import tpu as pltpu


def _stretch_kernel(x_ref, p_ref, o_ref):
    # Upcast in-register; x_ref may be bf16/f16/f32.
    x = x_ref[...].astype(jnp.float32)            # (tile_rows, tile_d)
    pows = p_ref[0:1, :]                          # (1, tile_d), broadcast over rows
    ws = p_ref[1:2, :]
    bs = p_ref[2:3, :]
    zero_case = p_ref[3:4, :]                     # precomputed on host

    ax = jnp.abs(x)
    # Fold sign ((x>=0)*2-1) and the per-feature scale into one select.
    # (Matches torch: -0.0 >= 0 is True -> +ws.)
    w_signed = jnp.where(x >= 0, ws, -ws)

    # |x| ** pows = exp(p * log|x|): exactly 2 EUP transcendentals / element.
    # At ax == 0 this transiently produces 0 / inf / NaN; the single where
    # below repairs it to torch.pow semantics (0**0==1, 0**p==0 for p>0,
    # 0**p==inf for p<0) using the host-precomputed zero_case row.
    powv = jnp.exp(pows * jnp.log(ax))
    powv = jnp.where(ax == 0.0, zero_case, powv)

    o_ref[...] = (powv * w_signed + bs).astype(o_ref.dtype)


def _round_up(n, m):
    return ((n + m - 1) // m) * m


@functools.partial(jax.jit, static_argnames=("target_block_bytes",))
def stretch(x, pows, ws, bs, *, target_block_bytes=2 << 20):
    """x: (batch, d); pows/ws/bs: (d,). Returns (batch, d) in x.dtype."""
    batch, d = x.shape
    itemsize = jnp.dtype(x.dtype).itemsize
    # Sub-32-bit dtypes pack along sublanes: keep row tiles a multiple of the
    # native sublane packing (8 for f32, 16 for bf16/f16, ...).
    sublane_mult = 8 * max(1, 4 // itemsize)

    # ---- pack parameters (f32): [pows, ws, bs, zero_case] -> (4, d) ----------
    p32 = pows.astype(jnp.float32)
    zero_case = jnp.where(p32 == 0.0, 1.0, jnp.where(p32 > 0.0, 0.0, jnp.inf))
    params = jnp.stack(
        [p32, ws.astype(jnp.float32), bs.astype(jnp.float32), zero_case]
    )                                                            # (4, d)

    # ---- feature (lane) tiling ------------------------------------------------
    if d % 128 == 0:
        tile_d = min(d, 2048)         # lane-dense, unmasked stores
    else:
        tile_d = d                    # full-extent last dim: only masked vst,
                                      # no padded copy of x in HBM
    grid_cols = pl.cdiv(d, tile_d)

    # ---- row (sublane) tiling: ~target_block_bytes of input per block --------
    if batch <= sublane_mult:
        tile_rows = batch             # full-extent rows block (always legal)
    else:
        rows_for_target = target_block_bytes // (itemsize * tile_d)
        rows_for_target = max(
            sublane_mult, (rows_for_target // sublane_mult) * sublane_mult
        )
        tile_rows = min(rows_for_target, _round_up(batch, sublane_mult), 4096)
    grid_rows = pl.cdiv(batch, tile_rows)

    # v7x has 2 TensorCores: make sure there are >=2 parallel blocks to shard.
    if grid_rows * grid_cols < 2 and batch > sublane_mult:
        tile_rows = max(sublane_mult,
                        _round_up(pl.cdiv(batch, 2), sublane_mult))
        grid_rows = pl.cdiv(batch, tile_rows)

    grid = (grid_rows, grid_cols)
    row_spec = pl.BlockSpec((tile_rows, tile_d), lambda i, j: (i, j))
    par_spec = pl.BlockSpec((4, tile_d), lambda i, j: (0, j))

    return pl.pallas_call(
        _stretch_kernel,
        out_shape=jax.ShapeDtypeStruct((batch, d), x.dtype),
        grid=grid,
        in_specs=[row_spec, par_spec],
        out_specs=row_spec,
        compiler_params=pltpu.CompilerParams(
            dimension_semantics=("parallel", "parallel"),
        ),
        cost_estimate=pl.CostEstimate(
            flops=6 * batch * d,
            transcendentals=2 * batch * d,
            bytes_accessed=2 * itemsize * batch * d + 16 * d,
        ),
    )(x, params)


def stretch_ref(x, pows, ws, bs):
    sign = jnp.where(x >= 0, 1.0, -1.0)
    return jnp.abs(x) ** pows * sign * ws + bs


if __name__ == "__main__":
    key = jax.random.PRNGKey(0)
    kx, kp, kw, kb, kx2, kx3 = jax.random.split(key, 6)

    # ---- case 1: lane/sublane-friendly shape ----
    batch, d = 16, 128
    x = jax.random.normal(kx, (batch, d), dtype=jnp.float32)
    pows = 1.0 + 0.5 * jax.random.uniform(kp, (d,), dtype=jnp.float32)
    ws = 1.0 + 0.1 * jax.random.normal(kw, (d,), dtype=jnp.float32)
    bs = 0.1 * jax.random.normal(kb, (d,), dtype=jnp.float32)

    out = jax.block_until_ready(stretch(x, pows, ws, bs))
    ref = stretch_ref(x, pows, ws, bs)
    assert out.shape == (batch, d) and out.dtype == jnp.float32
    assert jnp.allclose(out, ref, atol=1e-5, rtol=1e-5), "mismatch (128-wide)"

    # ---- case 2: ragged rows + d not a multiple of 128, with x==0 and p==0 ----
    batch2, d2 = 13, 96
    x2 = jax.random.normal(kx2, (batch2, d2), dtype=jnp.float32)
    x2 = x2.at[0, 0].set(0.0)                       # exercise the zero_case path
    pows2 = pows[:d2].at[1].set(0.0)                # exercise p == 0
    ws2, bs2 = ws[:d2], bs[:d2]
    out2 = jax.block_until_ready(stretch(x2, pows2, ws2, bs2))
    ref2 = stretch_ref(x2, pows2, ws2, bs2)
    assert out2.shape == (batch2, d2)
    assert jnp.allclose(out2, ref2, atol=1e-5, rtol=1e-5), "mismatch (ragged)"

    # ---- case 3: bf16 input -> bf16 output (no wrapper-side upcast) ----
    batch3, d3 = 32, 256
    x3 = jax.random.normal(kx3, (batch3, d3), dtype=jnp.float32).astype(jnp.bfloat16)
    pows3 = jnp.concatenate([pows, pows])
    ws3 = jnp.concatenate([ws, ws])
    bs3 = jnp.concatenate([bs, bs])
    out3 = jax.block_until_ready(stretch(x3, pows3, ws3, bs3))
    ref3 = stretch_ref(x3.astype(jnp.float32), pows3, ws3, bs3)
    assert out3.shape == (batch3, d3) and out3.dtype == jnp.bfloat16
    assert jnp.allclose(out3.astype(jnp.float32), ref3, atol=2e-2, rtol=2e-2), \
        "mismatch (bf16)"

    print("KERNEL_OK")
</pallas_src>

<mosaic_0001>
module attributes {stable_mosaic.version = 11 : i64} {
  func.func @_stretch_kernel(%arg0: i32, %arg1: i32, %arg2: memref<8x128xf32, #tpu.memory_space<vmem>>, %arg3: memref<4x128xf32, #tpu.memory_space<vmem>>, %arg4: memref<8x128xf32, #tpu.memory_space<vmem>>) attributes {dimension_semantics = [#tpu.dimension_semantics<parallel>, #tpu.dimension_semantics<parallel>], iteration_bounds = array<i64: 2, 1>, scalar_prefetch = 0 : i64, scratch_operands = 0 : i64, tpu.core_type = #tpu.core_type<tc>, window_params = [{transform_indices = @transform_0, window_bounds = array<i64: 8, 128>}, {transform_indices = @transform_1, window_bounds = array<i64: 4, 128>}, {transform_indices = @transform_2, window_bounds = array<i64: 8, 128>}]} {
    %c0 = arith.constant 0 : index
    %c0_0 = arith.constant 0 : index
    %0 = vector.load %arg2[%c0, %c0_0] : memref<8x128xf32, #tpu.memory_space<vmem>>, vector<8x128xf32>
    %c0_1 = arith.constant 0 : index
    %c0_2 = arith.constant 0 : index
    %1 = vector.load %arg3[%c0_1, %c0_2] : memref<4x128xf32, #tpu.memory_space<vmem>>, vector<1x128xf32>
    %c1 = arith.constant 1 : index
    %c0_3 = arith.constant 0 : index
    %2 = vector.load %arg3[%c1, %c0_3] : memref<4x128xf32, #tpu.memory_space<vmem>>, vector<1x128xf32>
    %c2 = arith.constant 2 : index
    %c0_4 = arith.constant 0 : index
    %3 = vector.load %arg3[%c2, %c0_4] : memref<4x128xf32, #tpu.memory_space<vmem>>, vector<1x128xf32>
    %c3 = arith.constant 3 : index
    %c0_5 = arith.constant 0 : index
    %4 = vector.load %arg3[%c3, %c0_5] : memref<4x128xf32, #tpu.memory_space<vmem>>, vector<1x128xf32>
    %5 = math.absf %0 : vector<8x128xf32>
    %cst = arith.constant 0.000000e+00 : f32
    %6 = vector.broadcast %cst : f32 to vector<8x128xf32>
    %7 = arith.cmpf oge, %0, %6 : vector<8x128xf32>
    %cst_6 = arith.constant 0.000000e+00 : f32
    %8 = vector.broadcast %cst_6 : f32 to vector<1x128xf32>
    %9 = arith.subf %8, %2 : vector<1x128xf32>
    %10 = vector.shape_cast %2 : vector<1x128xf32> to vector<1x128xf32>
    %11 = vector.broadcast %10 : vector<1x128xf32> to vector<8x128xf32>
    %12 = vector.shape_cast %9 : vector<1x128xf32> to vector<1x128xf32>
    %13 = vector.broadcast %12 : vector<1x128xf32> to vector<8x128xf32>
    %14 = arith.select %7, %11, %13 : vector<8x128xi1>, vector<8x128xf32>
    %15 = math.log %5 : vector<8x128xf32>
    %16 = vector.broadcast %1 : vector<1x128xf32> to vector<8x128xf32>
    %17 = arith.mulf %16, %15 : vector<8x128xf32>
    %18 = math.exp %17 : vector<8x128xf32>
    %cst_7 = arith.constant 0.000000e+00 : f32
    %19 = vector.broadcast %cst_7 : f32 to vector<8x128xf32>
    %20 = arith.cmpf oeq, %5, %19 : vector<8x128xf32>
    %21 = vector.shape_cast %4 : vector<1x128xf32> to vector<1x128xf32>
    %22 = vector.broadcast %21 : vector<1x128xf32> to vector<8x128xf32>
    %23 = arith.select %20, %22, %18 : vector<8x128xi1>, vector<8x128xf32>
    %24 = arith.mulf %23, %14 : vector<8x128xf32>
    %25 = vector.broadcast %3 : vector<1x128xf32> to vector<8x128xf32>
    %26 = arith.addf %24, %25 : vector<8x128xf32>
    %c0_8 = arith.constant 0 : index
    %c0_9 = arith.constant 0 : index
    %27 = vector.load %arg4[%c0_8, %c0_9] : memref<8x128xf32, #tpu.memory_space<vmem>>, vector<8x128xf32>
    tpu.vector_store %arg4[%c0_8, %c0_9], %26 {strides = array<i32>} : memref<8x128xf32, #tpu.memory_space<vmem>>, vector<8x128xf32>,
    return
  }
  func.func @transform_0(%arg0: i32, %arg1: i32) -> (i32, i32) {
    %c0_i32 = arith.constant 0 : i32
    return %arg0, %arg1 : i32, i32
  }
  func.func @transform_1(%arg0: i32, %arg1: i32) -> (i32, i32) {
    %c0_i32 = arith.constant 0 : i32
    %c0_i32_0 = arith.constant 0 : i32
    return %c0_i32, %arg1 : i32, i32
  }
  func.func @transform_2(%arg0: i32, %arg1: i32) -> (i32, i32) {
    %c0_i32 = arith.constant 0 : i32
    return %arg0, %arg1 : i32, i32
  }
}

</mosaic_0001>

<bundles_post_ra>
// kernel: stretch.1
= control target key start
LH: loop header
LB: loop body
LE: loop exit
PB: predicated region body
PF: predicated region fallthrough
CT: control target
= control target key end

     0   :  { %7 = vsyncpa [#allocation3], 0  ;;  %s698_s0 = inlined_call_operand.hbm [shape: f32[16,128], index: 0, kind: input, shape index: {}]   ;;  %s699_s1 = inlined_call_operand.vmem [shape: f32[4,128], index: 1, kind: input, shape index: {}]   ;;  %s700_s2 = inlined_call_operand.hbm [shape: f32[16,128], index: 2, kind: output, shape index: {}]  }
   0x1   :  { %9 = vsyncpa [#allocation3 + $0x1], 0 }
   0x2   :  { %10 = vsyncpa [#allocation4], 0 }
   0x3   :  { %12 = vsyncpa [#allocation4 + $0x1], 0  ;;  %s552_s9 = smov 0   ;;  %s554_s10 = smov 0  }
   0x4   :  { %s556_s11 = smov 0   ;;  %s558_s12 = smov 0  }
   0x5   :  { %s560_s13 = smov 0   ;;  %s562_s14 = smov 0  }
   0x6 LB: > { %s342_s15 = sadd.s32 4294967295, %s533_s14   ;;  %s343_s16 = sadd.s32 4294967294, %s533_s14   ;;  %s533_s14 = sphi %s562_s14, %s18_s14   ;;  %s529_s13 = sphi %s560_s13, %s712_s13   ;;  %s525_s12 = sphi %s558_s12, %s711_s12   ;;  %s521_s11 = sphi %s556_s11, %s710_s11   ;;  %s517_s10 = sphi %s554_s10, %s709_s10   ;;  %s513_s9 = sphi %s552_s9, %s708_s9  }
   0x7   : > { %s30_s17 = sadd.s32 1, %s529_s13  ;;  %s39_s18 = sadd.s32 1, %s521_s11 }
   0x8   : > { %p32_p0 = scmp.ge.s32.totalorder %s30_s17, 2  ;;  %p46_p1 = scmp.ne.s32.totalorder %s521_s11, %s517_s10 }
   0x9   : > { %p47_p2 = scmp.eq.s32.totalorder %s533_s14, 0  ;;  %p52_p3 = scmp.ne.s32.totalorder %s517_s10, %s513_s9 }
   0xa   : > { %s714_s17 = smov (%p32_p0, %s30_s17), 0  ;;  %p53_p5 = scmp.eq.s32.totalorder %s342_s15, 0 }
   0xb   : > { %p593_p4 = por %p47_p2, %p46_p1  ;;  %s34_s20 = ssub.s32 %s529_s13, %s714_s17 }
   0xc   : > { %p104_p6 = scmp.eq.s32.totalorder %s342_s15, 1  ;;  %p37_p7 = scmp.eq.s32.totalorder %s34_s20, 0 }
   0xd   : > { %p599_p8 = por %p53_p5, %p52_p3  ;;  %p110_p10 = scmp.eq.s32.totalorder %s343_s16, 1 }
   0xe   : > { %p603_p9 = por %p104_p6, %p46_p1  ;;  %p371_p13 = scmp.lt.s32.totalorder %s533_s14, 2 }
   0xf   : > { %s608_s23 = scalar_select %p37_p7, %s521_s11, %s39_s18  }
  0x10   : > { %p610_p11 = por %p110_p10, %p52_p3  ;;  %s137_s25 = sand.u32 1, %s521_s11  }
  0x11   : > { %s347_s26 = sshll.u32 %s137_s25, 3  ;;  %s348_s27 = sshll.u32 %s529_s13, 7 }
  0x12   : > { %s704_s24 = scalar_select %p610_p11, 1, 0 }
  0x13   : > { %s147_s30 = scalar_lea.hbm %s698_s0, %s348_s27  ;;  %s141_s3 = scalar_lea.vmem [#allocation2], %s347_s26 }
  0x14   : > { %s149_s4 = sshll.u32 %s141_s3, 4  ;;  %p623_p0 = pnand %p371_p13, %p593_p4  ;;  %s150_s4 = int_to_ptr.vmem [resolvable:$true] %s149_s4 }
  0x15   : > { %p349_p1 = scmp.ge.s32.totalorder %s533_s14, 1  ;;  %p154_p2 = scmp.lt.s32.totalorder %s533_s14, 3 }
  0x16   : > { %s138_s6 = scalar_lea.sflag [#allocation3], %s137_s25  ;;  %p427_p3 = pneg %p623_p0 }
  0x17   : > { %s438_s7 = scalar_lea.vmem %s150_s4, 128  ;;  %s535_s8 = smov [#allocation2]  }
  0x18   : > { %p439_p5 = scmp.ne.s32.totalorder %s150_s4, %s438_s7  ;;  %s443_s15 = sshll.u32 %s535_s8, 4  ;;  %s444_s15 = int_to_ptr.vmem [resolvable:$false] %s443_s15 }
  0x19   : > { %s445_s16 = scalar_lea.vmem %s444_s15, 256  ;;  %p446_p10 = scmp.lt.s32.totalorder %s150_s4, %s444_s15 }
  0x1a   : > { %p441_p6 = pnand %p439_p5, %p427_p3  ;;  %p447_p12 = scmp.lt.s32.totalorder %s445_s16, %s438_s7 }
  0x1c   : > { %p442_p7 = pneg %p441_p6  ;;  %p448_p4 = por %p447_p12, %p446_p10 }
  0x1e   : > { %p449_p13 = pnand %p448_p4, %p442_p7 }
  0x20   : > { %452 = shalt.err (!%p449_p13)
}
  0x21   : > { %366 = dma.hbm_to_vmem [thread:$0]  (!%p623_p0), %s147_s30, 128, %s150_s4, %s138_s6  }
  0x22   : > { %p155_p11 = pnand %p349_p1, %p154_p2 }
  0x23   : > { %s638_s18 = sand.u32 (!%p155_p11), 1, %s517_s10  }
  0x24   : > { %158 = sbr.rel (%p155_p11) target bundleno = 97 (0x61), region = 28  ;;  %s350_s19 = sshll.u32 (!%p155_p11), %s638_s18, 3 }
  0x25   : > { %s161_s20 = scalar_lea.sflag (!%p155_p11), [#allocation3], %s638_s18  ;;  %s164_s25 = scalar_lea.vmem (!%p155_p11), [#allocation2], %s350_s19 }
  0x29   : > { %504 = dma.done.wait (%p599_p8), %s161_s20, 128  }
  0x2a   : > { %506 = vsyncadd (%p599_p8), %s161_s20, 4294967168  ;;  %v193_v0 = vld [vmem:[%s164_s25] sm:$0xff]  ;;  %v201_v5 = vlaneseq  ;;  %s188_s5 = scalar_lea.vmem [#allocation5], %s350_s19  ;;  %s356_s7 = sshll.u32 %s525_s12, 7 }
  0x2b   : > { %v198_v1 = vand.u32 2147483647, %v193_v0  ;;  %v352_v3 = vld [vmem:[%s699_s1] ss:$0 sm:$0xff]  ;;  %v195_v9 = vld [vmem:[%s699_s1 + $0x1] sm:$0x1]  ;;  %s245_s16 = scalar_lea.hbm %s700_s2, %s356_s7 }
  0x2c   : > { %v202_v8 = vshrl.u32 %v201_v5, 7  ;;  %v200_v10 = vsub.f32 0.0, %v195_v9  ;;  %vm199_vm0 = vcmp.ge.f32.partialorder %v193_v0, 0.0  ;;  %v353_v14 = vld [vmem:[%s699_s1 + $0x3] ss:$0 sm:$0xff]  ;;  %s247_s6 = sshll.u32 %s188_s5, 4  ;;  %s248_s6 = int_to_ptr.vmem [resolvable:$true] %s247_s6 }
  0x2d   : > { %421 = vlog2.f32 %v198_v1  ;;  %vm219_vm1 = vcmp.eq.f32.partialorder %v198_v1, 0.0  ;;  %v354_v17 = vld [vmem:[%s699_s1 + $0x2] ss:$0 sm:$0xff]  ;;  %s233_s20 = scalar_lea.sflag [#allocation4], %s638_s18  ;;  %s453_s25 = scalar_lea.vmem %s248_s6, 128 }
  0x2e   : > { %v203_v11 = vsub.s32 0, %v202_v8  ;;  %p454_p8 = scmp.ne.s32.totalorder %s248_s6, %s453_s25  ;;  %s536_s26 = smov [#allocation5]  }
  0x2f   : > { %s457_s27 = sshll.u32 %s536_s26, 4  ;;  %s458_s27 = int_to_ptr.vmem [resolvable:$false] %s457_s27 }
  0x30   : > { %v204_v12 = vrot.slane %v195_v9, %v203_v11  ;;  %v208_v13 = vrot.slane %v200_v10, %v203_v11  ;;  %p455_p11 = pnand %p454_p8, %p603_p9  ;;  %s459_s19 = scalar_lea.vmem %s458_s27, 256 }
  0x31   : > { %p460_p0 = scmp.lt.s32.totalorder %s248_s6, %s458_s27  ;;  %p461_p1 = scmp.lt.s32.totalorder %s459_s19, %s453_s25 }
  0x32   : > { %v209_v15 = vsel %vm199_vm0, %v204_v12, %v208_v13  ;;  %p456_p12 = pneg %p455_p11 }
  0x33   : > { %p462_p2 = por %p461_p1, %p460_p0 }
  0x35   : > { %p463_p3 = pnand %p462_p2, %p456_p12 }
  0x3a   : > { %v422_v2 = vpop.eup %421 }
  0x3b   : > { %v211_v4 = vmul.f32 0.6931472, %v422_v2 }
  0x3d   : > { %v216_v6 = vmul.f32 %v352_v3, %v211_v4 }
  0x3f   : > { %v217_v7 = vmul.f32 1.442695, %v216_v6 }
  0x41   : > { %423 = vpow2.f32 %v217_v7 }
  0x4e   : > { %v424_v16 = vpop.eup %423 }
  0x4f   : > { %v224_v18 = vsel %vm219_vm1, %v353_v14, %v424_v16 }
  0x50   : > { %v225_v19 = vmul.f32 %v224_v18, %v209_v15 }
  0x52   : > { %v230_v20 = vadd.f32 %v354_v17, %v225_v19 }
  0x54   : > { %231 = vst [vmem:[%s188_s5] sm:$0xff] %v230_v20 }
  0x55   : > { %466 = shalt.err (!%p463_p3)
}
  0x56   : > { %s467_s12 = scalar_lea.hbm %s245_s16, 128  ;;  %s471_s29 = scalar_lea.hbm %s700_s2, 256 }
  0x57   : > { %p468_p5 = scmp.ne.s32.totalorder %s245_s16, %s467_s12  ;;  %p472_p10 = scmp.lt.s32.totalorder %s245_s16, %s700_s2 }
  0x58   : > { %p473_p4 = scmp.lt.s32.totalorder %s471_s29, %s467_s12 }
  0x59   : > { %p469_p6 = pnand %p468_p5, %p603_p9 }
  0x5a   : > { %p474_p13 = por %p473_p4, %p472_p10 }
  0x5b   : > { %p470_p7 = pneg %p469_p6 }
  0x5d   : > { %p475_p8 = pnand %p474_p13, %p470_p7 }
  0x5f   : > { %478 = shalt.err (!%p475_p8)
}
  0x60   : > { %361 = dma.vmem_to_hbm [thread:$0]  (%p603_p9), %s248_s6, 128, %s245_s16, %s233_s20  }
  0x61 PF: > { %s259_s3 = sand.u32 1, %s513_s9   ;;  %p706_p11 = scmp.ne.s32.totalorder %s704_s24, 0 }
  0x62   : > { %p707_p12 = scmp.ge.s32.totalorder %s533_s14, 2  ;;  %s260_s4 = scalar_lea.sflag [#allocation4], %s259_s3 }
  0x64   : > { %p368_p0 = pnand %p707_p12, %p706_p11 }
  0x66   : > { %p369_p1 = pneg %p368_p0 }
  0x68   : > { %508 = dma.done.wait (%p369_p1), %s260_s4, 128  }
  0x69   : > { %510 = vsyncadd (%p369_p1), %s260_s4, 4294967168  ;;  %s18_s14 = sadd.s32 1, %s533_s14   ;;  %s708_s9 = smov %s517_s10 }
  0x6a   : > { %p15_p2 = scmp.ge.s32.totalorder %s18_s14, 4   ;;  %s709_s10 = smov %s521_s11 }
  0x6b   : > { %s710_s11 = smov %s608_s23  ;;  %s711_s12 = smov %s529_s13 }
  0x6c   : > { %s712_s13 = smov %s714_s17  ;;  %17 = sbr.rel (!%p15_p2) target bundleno = 6 (0x6), region = 76 }
  0x71   :  { %265 = vsyncpa [#allocation3], 1 }
  0x72   :  { %267 = vsyncpa [#allocation3 + $0x1], 1 }
  0x73   :  { %268 = vsyncpa [#allocation4], 1 }
  0x74   :  { %270 = vsyncpa [#allocation4 + $0x1], 1 }

</bundles_post_ra>
